<compile_context>
chip_gen: v7x
topology: tpu7x:2x2x1
jax: 0.10.0
libtpu: 0.0.40
codegen_flags: <defaults>
</compile_context>

<pallas_src>
import functools

import jax
import jax.numpy as jnp
from jax import lax
from jax.experimental import pallas as pl
from jax.experimental.pallas import tpu as pltpu

INPUT_DIM = 54
K_PAD = 64            # padded feature dim (multiple of 8 sublanes, full-dim block)
HIDDEN = 256
NUM_HIDDEN_LAYERS = 2
BN_EPS = 1e-5
TILE_B_DEFAULT = 512  # rows per grid step (M dim of the MXU matmuls)


def mlp_kernel(x_ref, w1_ref, b1_ref, w2_ref, b2_ref, w3_ref, b3_ref, o_ref):
    """One batch tile of the MLP. BN is pre-folded into w/b; Dropout is identity."""
    cdt = w1_ref.dtype  # MXU input dtype (f32 or bf16); accumulation is always f32.

    # ---- hidden layer 1: (TILE_B, K_PAD) @ (K_PAD, HIDDEN) on the MXU ----
    h = jnp.dot(x_ref[...], w1_ref[...], preferred_element_type=jnp.float32)
    h = jnp.maximum(h + b1_ref[...], 0.0)           # bias + ReLU in f32 (VPU)

    # ---- hidden layer 2: (TILE_B, HIDDEN) @ (HIDDEN, HIDDEN) ----
    h = jnp.dot(h.astype(cdt), w2_ref[...], preferred_element_type=jnp.float32)
    h = jnp.maximum(h + b2_ref[...], 0.0)

    # ---- output head Linear(HIDDEN -> 1): VPU mul + lane reduction (MXU stays free) ----
    out = jnp.sum(h * w3_ref[...], axis=-1) + b3_ref[0]   # (TILE_B,)
    o_ref[...] = out[None, None, :].astype(o_ref.dtype)   # lane-dense (1, 1, TILE_B)


def fold_bn_into_linear(w, b, gamma, beta, mean, var, eps=BN_EPS):
    """Fold eval-mode BatchNorm1d into the preceding Linear."""
    s = gamma * lax.rsqrt(var + eps)     # (1, H)
    return w * s, (b - mean) * s + beta


def _round_up(n, m):
    return ((n + m - 1) // m) * m


@functools.partial(jax.jit, static_argnames=("compute_dtype", "tile_b"))
def minimax_helper_forward(x, params, compute_dtype=jnp.float32, tile_b=TILE_B_DEFAULT):
    """Mirrors MiniMaxHelper.forward: accepts (B, 54) or (54,), returns (B,) or (1,)."""
    if x.ndim == 1:
        x = x[None, :]
    x = x.astype(jnp.float32)

    (w1, b1, g1, be1, m1, v1,
     w2, b2, g2, be2, m2, v2,
     w3, b3) = params

    # Fold eval-mode BatchNorm into the linears.
    w1f, b1f = fold_bn_into_linear(w1, b1, g1, be1, m1, v1)
    w2f, b2f = fold_bn_into_linear(w2, b2, g2, be2, m2, v2)

    # Pad the feature (K) dim 54 -> 64 with zeros for aligned layout of the first matmul.
    w1f = jnp.pad(w1f, ((0, K_PAD - INPUT_DIM), (0, 0)))
    x = jnp.pad(x, ((0, 0), (0, K_PAD - INPUT_DIM)))

    # Batch tiling: pad B up to a multiple of the tile, slice the result afterwards.
    B = x.shape[0]
    tb = min(tile_b, _round_up(B, 128))
    B_pad = _round_up(B, tb)
    num_tiles = B_pad // tb
    if B_pad != B:
        x = jnp.pad(x, ((0, B_pad - B), (0, 0)))

    cdt = jnp.dtype(compute_dtype)
    x_c = x.astype(cdt)
    w1c = w1f.astype(cdt)
    w2c = w2f.astype(cdt)
    w3_row = w3.T.astype(jnp.float32)            # (1, HIDDEN), used on the VPU in f32
    b3_vec = b3.reshape((1,)).astype(jnp.float32)

    const2 = lambda i: (0, 0)

    out = pl.pallas_call(
        mlp_kernel,
        out_shape=jax.ShapeDtypeStruct((num_tiles, 1, tb), jnp.float32),
        grid=(num_tiles,),
        in_specs=[
            pl.BlockSpec((tb, K_PAD), lambda i: (i, 0)),        # x tile (pipelined)
            pl.BlockSpec((K_PAD, HIDDEN), const2),              # w1 (VMEM-resident)
            pl.BlockSpec((1, HIDDEN), const2),                  # b1
            pl.BlockSpec((HIDDEN, HIDDEN), const2),             # w2
            pl.BlockSpec((1, HIDDEN), const2),                  # b2
            pl.BlockSpec((1, HIDDEN), const2),                  # w3 row
            pl.BlockSpec(memory_space=pltpu.MemorySpace.SMEM),  # b3 scalar
        ],
        out_specs=pl.BlockSpec((1, 1, tb), lambda i: (i, 0, 0)),
        compiler_params=pltpu.CompilerParams(
            dimension_semantics=("parallel",)),
    )(x_c, w1c, b1f, w2c, b2f, w3_row, b3_vec)

    # (num_tiles, 1, tb) -> (B_pad,) -> (B,) ; matches output.squeeze(-1) in torch.
    return out.reshape(B_pad)[:B]


def init_params(key):
    """Deterministic init matching the module's layer shapes.
    Linear weights stored as (in_features, out_features) so the kernel does x @ W."""
    k1, k2, k3, k4, k5, k6 = jax.random.split(key, 6)

    def lin_init(kw, kb, fan_in, fan_out):
        bound = 1.0 / jnp.sqrt(jnp.float32(fan_in))
        w = jax.random.uniform(kw, (fan_in, fan_out), jnp.float32, -bound, bound)
        b = jax.random.uniform(kb, (1, fan_out), jnp.float32, -bound, bound)
        return w, b

    w1, b1 = lin_init(k1, k2, INPUT_DIM, HIDDEN)
    w2, b2 = lin_init(k3, k4, HIDDEN, HIDDEN)
    w3, b3 = lin_init(k5, k6, HIDDEN, 1)

    # BatchNorm1d params / running stats (fresh init: gamma=1, beta=0, mean=0, var=1)
    g1 = jnp.ones((1, HIDDEN), jnp.float32)
    be1 = jnp.zeros((1, HIDDEN), jnp.float32)
    m1 = jnp.zeros((1, HIDDEN), jnp.float32)
    v1 = jnp.ones((1, HIDDEN), jnp.float32)
    g2 = jnp.ones((1, HIDDEN), jnp.float32)
    be2 = jnp.zeros((1, HIDDEN), jnp.float32)
    m2 = jnp.zeros((1, HIDDEN), jnp.float32)
    v2 = jnp.ones((1, HIDDEN), jnp.float32)

    return (w1, b1, g1, be1, m1, v1,
            w2, b2, g2, be2, m2, v2,
            w3, b3)


def reference_forward(x, params):
    """Pure-JAX reference with explicit eval-mode BN (matches the PyTorch module)."""
    if x.ndim == 1:
        x = x[None, :]
    (w1, b1, g1, be1, m1, v1,
     w2, b2, g2, be2, m2, v2,
     w3, b3) = params
    h = x @ w1 + b1
    h = (h - m1) * lax.rsqrt(v1 + BN_EPS) * g1 + be1
    h = jnp.maximum(h, 0.0)
    h = h @ w2 + b2
    h = (h - m2) * lax.rsqrt(v2 + BN_EPS) * g2 + be2
    h = jnp.maximum(h, 0.0)
    return (h @ w3 + b3)[:, 0]


# TODO(synk): training-mode Dropout / BatchNorm batch statistics are not implemented
# (the PyTorch module is used for inference; eval semantics are reproduced exactly).

if __name__ == "__main__":
    key = jax.random.PRNGKey(0)
    kp, kx1, kx2 = jax.random.split(key, 3)
    params = init_params(kp)

    # Small batch (typical inference call).
    x_small = jax.random.normal(kx1, (8, INPUT_DIM), jnp.float32)
    y_small = jax.block_until_ready(minimax_helper_forward(x_small, params))
    y_small_ref = reference_forward(x_small, params)
    assert y_small.shape == (8,)
    assert jnp.allclose(y_small, y_small_ref, atol=1e-4, rtol=1e-4)

    # Batch that does not divide the tile: exercises the grid + padding path.
    x_big = jax.random.normal(kx2, (300, INPUT_DIM), jnp.float32)
    y_big = jax.block_until_ready(
        minimax_helper_forward(x_big, params, tile_b=128))
    y_big_ref = reference_forward(x_big, params)
    assert y_big.shape == (300,)
    assert jnp.allclose(y_big, y_big_ref, atol=1e-4, rtol=1e-4)

    # bf16 MXU-input fast path (v6e/v7x): f32 accumulation, looser tolerance.
    y_bf16 = jax.block_until_ready(
        minimax_helper_forward(x_big, params, compute_dtype=jnp.bfloat16, tile_b=128))
    assert y_bf16.shape == (300,)
    assert jnp.allclose(y_bf16, y_big_ref, atol=1e-1, rtol=1e-1)

    print("KERNEL_OK")
</pallas_src>

<mosaic_0001>
module attributes {stable_mosaic.version = 11 : i64} {
  func.func @mlp_kernel(%arg0: i32, %arg1: memref<128x64xf32, #tpu.memory_space<vmem>>, %arg2: memref<64x256xf32, #tpu.memory_space<vmem>>, %arg3: memref<1x256xf32, #tpu.memory_space<vmem>>, %arg4: memref<256x256xf32, #tpu.memory_space<vmem>>, %arg5: memref<1x256xf32, #tpu.memory_space<vmem>>, %arg6: memref<1x256xf32, #tpu.memory_space<vmem>>, %arg7: memref<1xf32, #tpu.memory_space<smem>>, %arg8: memref<1x1x128xf32, #tpu.memory_space<vmem>>) attributes {dimension_semantics = [#tpu.dimension_semantics<parallel>], iteration_bounds = array<i64: 1>, scalar_prefetch = 0 : i64, scratch_operands = 0 : i64, tpu.core_type = #tpu.core_type<tc>, window_params = [{transform_indices = @transform_0, window_bounds = array<i64: 128, 64>}, {pipeline_mode = #tpu.pipeline_mode<synchronous>, transform_indices = @transform_1, window_bounds = array<i64: 64, 256>}, {pipeline_mode = #tpu.pipeline_mode<synchronous>, transform_indices = @transform_2, window_bounds = array<i64: 1, 256>}, {pipeline_mode = #tpu.pipeline_mode<synchronous>, transform_indices = @transform_3, window_bounds = array<i64: 256, 256>}, {pipeline_mode = #tpu.pipeline_mode<synchronous>, transform_indices = @transform_4, window_bounds = array<i64: 1, 256>}, {pipeline_mode = #tpu.pipeline_mode<synchronous>, transform_indices = @transform_5, window_bounds = array<i64: 1, 256>}, {transform_indices = @transform_6, window_bounds = array<i64: 1>}, {transform_indices = @transform_7, window_bounds = array<i64: 1, 1, 128>}]} {
    %c0 = arith.constant 0 : index
    %c0_0 = arith.constant 0 : index
    %0 = vector.load %arg1[%c0, %c0_0] : memref<128x64xf32, #tpu.memory_space<vmem>>, vector<128x64xf32>
    %c0_1 = arith.constant 0 : index
    %c0_2 = arith.constant 0 : index
    %1 = vector.load %arg2[%c0_1, %c0_2] : memref<64x256xf32, #tpu.memory_space<vmem>>, vector<64x256xf32>
    %cst = arith.constant dense<0.000000e+00> : vector<128x256xf32>
    %2 = tpu.matmul %0, %1, %cst {dimension_numbers = #tpu.dot_dimension_numbers<[1], [0], [0], [1], [0, 0, 1, 1], [], []>} : vector<128x64xf32>, vector<64x256xf32>, vector<128x256xf32> -> vector<128x256xf32>
    %c0_3 = arith.constant 0 : index
    %c0_4 = arith.constant 0 : index
    %3 = vector.load %arg3[%c0_3, %c0_4] : memref<1x256xf32, #tpu.memory_space<vmem>>, vector<1x256xf32>
    %4 = vector.broadcast %3 : vector<1x256xf32> to vector<128x256xf32>
    %5 = arith.addf %2, %4 : vector<128x256xf32>
    %cst_5 = arith.constant 0.000000e+00 : f32
    %6 = vector.broadcast %cst_5 : f32 to vector<128x256xf32>
    %7 = arith.maximumf %5, %6 : vector<128x256xf32>
    %c0_6 = arith.constant 0 : index
    %c0_7 = arith.constant 0 : index
    %8 = vector.load %arg4[%c0_6, %c0_7] : memref<256x256xf32, #tpu.memory_space<vmem>>, vector<256x256xf32>
    %cst_8 = arith.constant dense<0.000000e+00> : vector<128x256xf32>
    %9 = tpu.matmul %7, %8, %cst_8 {dimension_numbers = #tpu.dot_dimension_numbers<[1], [0], [0], [1], [0, 0, 1, 1], [], []>} : vector<128x256xf32>, vector<256x256xf32>, vector<128x256xf32> -> vector<128x256xf32>
    %c0_9 = arith.constant 0 : index
    %c0_10 = arith.constant 0 : index
    %10 = vector.load %arg5[%c0_9, %c0_10] : memref<1x256xf32, #tpu.memory_space<vmem>>, vector<1x256xf32>
    %11 = vector.broadcast %10 : vector<1x256xf32> to vector<128x256xf32>
    %12 = arith.addf %9, %11 : vector<128x256xf32>
    %cst_11 = arith.constant 0.000000e+00 : f32
    %13 = vector.broadcast %cst_11 : f32 to vector<128x256xf32>
    %14 = arith.maximumf %12, %13 : vector<128x256xf32>
    %c0_12 = arith.constant 0 : index
    %c0_13 = arith.constant 0 : index
    %15 = vector.load %arg6[%c0_12, %c0_13] : memref<1x256xf32, #tpu.memory_space<vmem>>, vector<1x256xf32>
    %16 = vector.broadcast %15 : vector<1x256xf32> to vector<128x256xf32>
    %17 = arith.mulf %14, %16 : vector<128x256xf32>
    %cst_14 = arith.constant dense<0.000000e+00> : vector<128xf32>
    %18 = vector.multi_reduction <add>, %17, %cst_14 [1] : vector<128x256xf32> to vector<128xf32>
    %c0_15 = arith.constant 0 : index
    %19 = memref.load %arg7[%c0_15] : memref<1xf32, #tpu.memory_space<smem>>
    %20 = vector.broadcast %19 : f32 to vector<128xf32>
    %21 = arith.addf %18, %20 : vector<128xf32>
    %22 = vector.shape_cast %21 : vector<128xf32> to vector<1x1x128xf32>
    %c0_16 = arith.constant 0 : index
    %c0_17 = arith.constant 0 : index
    %c0_18 = arith.constant 0 : index
    %23 = vector.load %arg8[%c0_16, %c0_17, %c0_18] : memref<1x1x128xf32, #tpu.memory_space<vmem>>, vector<1x1x128xf32>
    tpu.vector_store %arg8[%c0_16, %c0_17, %c0_18], %22 {strides = array<i32>} : memref<1x1x128xf32, #tpu.memory_space<vmem>>, vector<1x1x128xf32>,
    return
  }
  func.func @transform_0(%arg0: i32) -> (i32, i32) {
    %c0_i32 = arith.constant 0 : i32
    %c0_i32_0 = arith.constant 0 : i32
    return %arg0, %c0_i32 : i32, i32
  }
  func.func @transform_1(%arg0: i32) -> (i32, i32) {
    %c0_i32 = arith.constant 0 : i32
    %c0_i32_0 = arith.constant 0 : i32
    %c0_i32_1 = arith.constant 0 : i32
    return %c0_i32, %c0_i32_0 : i32, i32
  }
  func.func @transform_2(%arg0: i32) -> (i32, i32) {
    %c0_i32 = arith.constant 0 : i32
    %c0_i32_0 = arith.constant 0 : i32
    %c0_i32_1 = arith.constant 0 : i32
    return %c0_i32, %c0_i32_0 : i32, i32
  }
  func.func @transform_3(%arg0: i32) -> (i32, i32) {
    %c0_i32 = arith.constant 0 : i32
    %c0_i32_0 = arith.constant 0 : i32
    %c0_i32_1 = arith.constant 0 : i32
    return %c0_i32, %c0_i32_0 : i32, i32
  }
  func.func @transform_4(%arg0: i32) -> (i32, i32) {
    %c0_i32 = arith.constant 0 : i32
    %c0_i32_0 = arith.constant 0 : i32
    %c0_i32_1 = arith.constant 0 : i32
    return %c0_i32, %c0_i32_0 : i32, i32
  }
  func.func @transform_5(%arg0: i32) -> (i32, i32) {
    %c0_i32 = arith.constant 0 : i32
    %c0_i32_0 = arith.constant 0 : i32
    %c0_i32_1 = arith.constant 0 : i32
    return %c0_i32, %c0_i32_0 : i32, i32
  }
  func.func @transform_6(%arg0: i32) -> i32 {
    %c0_i32 = arith.constant 0 : i32
    %c0_i32_0 = arith.constant 0 : i32
    return %c0_i32 : i32
  }
  func.func @transform_7(%arg0: i32) -> (i32, i32, i32) {
    %c0_i32 = arith.constant 0 : i32
    %c0_i32_0 = arith.constant 0 : i32
    %c0_i32_1 = arith.constant 0 : i32
    return %arg0, %c0_i32, %c0_i32_0 : i32, i32, i32
  }
}

</mosaic_0001>

<bundles_post_ra>
// kernel: minimax_helper_forward.1
= control target key start
LH: loop header
LB: loop body
LE: loop exit
PB: predicated region body
PF: predicated region fallthrough
CT: control target
= control target key end

     0   :  { %v954_v3 = vmov 0.0   ;;  %vm71_vm0 = vcmask 523264   ;;  %vm719_vm1 = vcmask 130112   ;;  %vm726_vm2 = vcmask 195712   ;;  %s1514_s1 = inlined_call_operand.vmem [shape: f32[64,256], index: 1, kind: input, shape index: {}]   ;;  %s1515_s3 = inlined_call_operand.vmem [shape: f32[256,256], index: 3, kind: input, shape index: {}]   ;;  %s1516_s0 = inlined_call_operand.vmem [shape: f32[128,64], index: 0, kind: input, shape index: {}]   ;;  %s1517_s2 = inlined_call_operand.vmem [shape: f32[1,256], index: 2, kind: input, shape index: {}]   ;;  %s1518_s4 = inlined_call_operand.vmem [shape: f32[1,256], index: 4, kind: input, shape index: {}]   ;;  %s1519_s5 = inlined_call_operand.vmem [shape: f32[1,256], index: 5, kind: input, shape index: {}]   ;;  %s1520_s6 = inlined_call_operand.<no memory space> [shape: f32[1], index: 6, kind: input, shape index: {}]   ;;  %s1521_s7 = inlined_call_operand.vmem [shape: f32[1,1,128], index: 7, kind: output, shape index: {}]  }
   0x1   :  { %v44_v0 = vld [vmem:[%s1514_s1 + $0x8] sm:$0xff]  ;;  %v46_v1 = vld [vmem:[%s1514_s1 + $0x18] sm:$0xff]  ;;  %v43_v2 = vld [vmem:[%s1514_s1] sm:$0xff]  ;;  %184 = vmatprep.mubr.f32.mxu0 %v954_v3  ;;  %vm733_vm3 = vcmask 261312   ;;  %vm740_vm4 = vcmask 326912   ;;  %vm747_vm5 = vcmask 392512  }
   0x2   :  { %v841_v4 = vpack.c.bf16 %v46_v1, %v44_v0  ;;  %v45_v5 = vld [vmem:[%s1514_s1 + $0x10] sm:$0xff]  ;;  %v48_v6 = vld [vmem:[%s1514_s1 + $0x28] sm:$0xff]  ;;  %v50_v7 = vld [vmem:[%s1514_s1 + $0x38] sm:$0xff]  ;;  %vm754_vm6 = vcmask 458112   ;;  %vm761_vm7 = vcmask 523712   ;;  %vm768_vm8 = vcmask 589312  }
   0x3   :  { %v843_v8 = vpack.c.bf16 %v45_v5, %v43_v2  ;;  %v845_v9 = vpack.c.bf16 %v50_v7, %v48_v6  ;;  %v47_v10 = vld [vmem:[%s1514_s1 + $0x20] sm:$0xff]  ;;  %v49_v11 = vld [vmem:[%s1514_s1 + $0x30] sm:$0xff]  ;;  %v52_v12 = vld [vmem:[%s1514_s1 + $0x48] sm:$0xff]  ;;  %vm775_vm9 = vcmask 654912   ;;  %vm782_vm10 = vcmask 720512  }
   0x4   :  { %842 = vmatprep.subr.bf16.mxu0 %v841_v4  ;;  %v54_v13 = vld [vmem:[%s1514_s1 + $0x58] sm:$0xff]  ;;  %v847_v14 = vpack.c.bf16 %v49_v11, %v47_v10  ;;  %v51_v16 = vld [vmem:[%s1514_s1 + $0x40] sm:$0xff]  ;;  %v53_v17 = vld [vmem:[%s1514_s1 + $0x50] sm:$0xff]  ;;  %vm789_vm11 = vcmask 786112   ;;  %vm796_vm12 = vcmask 851712   ;;  %vm803_vm13 = vcmask 917312  }
   0x5   :  { %844 = vmatpush1.bf16.msra.mxu0 %v843_v8  ;;  %v849_v15 = vpack.c.bf16 %v54_v13, %v52_v12  ;;  %v56_v18 = vld [vmem:[%s1514_s1 + $0x68] sm:$0xff]  ;;  %v58_v19 = vld [vmem:[%s1514_s1 + $0x78] sm:$0xff]  ;;  %v851_v20 = vpack.c.bf16 %v53_v17, %v51_v16  ;;  %v55_v22 = vld [vmem:[%s1514_s1 + $0x60] sm:$0xff]  ;;  %vm810_vm14 = vcmask 982912   ;;  %vm817_vm15 = vcmask 1048512  }
   0x6   :  { %846 = vmatprep.subr.bf16.mxu0 %v845_v9  ;;  %v853_v21 = vpack.c.bf16 %v58_v19, %v56_v18  ;;  %v57_v23 = vld [vmem:[%s1514_s1 + $0x70] sm:$0xff]  ;;  %v314_v24 = vld [vmem:[%s1515_s3 + $0x8] sm:$0xff]  ;;  %v316_v25 = vld [vmem:[%s1515_s3 + $0x18] sm:$0xff] }
   0x7   :  { %v313_v26 = vld [vmem:[%s1515_s3] sm:$0xff]  ;;  %v315_v27 = vld [vmem:[%s1515_s3 + $0x10] sm:$0xff]  ;;  %v855_v28 = vpack.c.bf16 %v57_v23, %v55_v22  ;;  %v857_v29 = vpack.c.bf16 %v316_v25, %v314_v24  ;;  %v318_v30 = vld [vmem:[%s1515_s3 + $0x28] sm:$0xff] }
   0x8   :  { %v320_v31 = vld [vmem:[%s1515_s3 + $0x38] sm:$0xff]  ;;  %v859_v32 = vpack.c.bf16 %v315_v27, %v313_v26  ;;  %v317_v34 = vld [vmem:[%s1515_s3 + $0x20] sm:$0xff]  ;;  %v319_v35 = vld [vmem:[%s1515_s3 + $0x30] sm:$0xff] }
   0x9   :  { %848 = vmatpush1.bf16.msra.mxu0 %v847_v14  ;;  %v861_v33 = vpack.c.bf16 %v320_v31, %v318_v30  ;;  %921 = vmatprep.subr.bf16.mxu1 %v857_v29  ;;  %v27_v36 = vld [vmem:[%s1516_s0] sm:$0xff]  ;;  %v322_v37 = vld [vmem:[%s1515_s3 + $0x48] sm:$0xff]  ;;  %v324_v38 = vld [vmem:[%s1515_s3 + $0x58] sm:$0xff]  ;;  %v863_v39 = vpack.c.bf16 %v319_v35, %v317_v34 }
   0xa   :  { %850 = vmatprep.subr.bf16.mxu0 %v849_v15  ;;  %937 = vmatpush1.bf16.msra.mxu1 %v859_v32  ;;  %v321_v40 = vld [vmem:[%s1515_s3 + $0x40] sm:$0xff]  ;;  %v323_v41 = vld [vmem:[%s1515_s3 + $0x50] sm:$0xff]  ;;  %v865_v42 = vpack.c.bf16 %v324_v38, %v322_v37  ;;  %v28_v43 = vld [vmem:[%s1516_s0 + $0x8] sm:$0xff] }
   0xb   :  { %922 = vmatprep.subr.bf16.mxu1 %v861_v33  ;;  %v326_v44 = vld [vmem:[%s1515_s3 + $0x68] sm:$0xff]  ;;  %v328_v45 = vld [vmem:[%s1515_s3 + $0x78] sm:$0xff]  ;;  %v867_v46 = vpack.c.bf16 %v323_v41, %v321_v40  ;;  %v325_v47 = vld [vmem:[%s1515_s3 + $0x60] sm:$0xff] }
   0xc   :  { %v327_v48 = vld [vmem:[%s1515_s3 + $0x70] sm:$0xff]  ;;  %v869_v49 = vpack.c.bf16 %v328_v45, %v326_v44  ;;  %v330_v51 = vld [vmem:[%s1515_s3 + $0x88] sm:$0xff]  ;;  %v332_v52 = vld [vmem:[%s1515_s3 + $0x98] sm:$0xff] }
   0xd   :  { %852 = vmatpush1.bf16.msra.mxu0 %v851_v20  ;;  %v29_v50 = vld [vmem:[%s1516_s0 + $0x10] sm:$0xff]  ;;  %v871_v53 = vpack.c.bf16 %v327_v48, %v325_v47  ;;  %v329_v54 = vld [vmem:[%s1515_s3 + $0x80] sm:$0xff]  ;;  %v873_v56 = vpack.c.bf16 %v332_v52, %v330_v51  ;;  %v30_v57 = vld [vmem:[%s1516_s0 + $0x18] sm:$0xff] }
   0xe   :  { %854 = vmatprep.subr.bf16.mxu0 %v853_v21  ;;  %938 = vmatpush1.bf16.msra.mxu1 %v863_v39  ;;  %v331_v55 = vld [vmem:[%s1515_s3 + $0x90] sm:$0xff]  ;;  %v334_v58 = vld [vmem:[%s1515_s3 + $0xa8] sm:$0xff]  ;;  %v336_v59 = vld [vmem:[%s1515_s3 + $0xb8] sm:$0xff] }
   0xf   :  { %923 = vmatprep.subr.bf16.mxu1 %v865_v42  ;;  %v875_v60 = vpack.c.bf16 %v331_v55, %v329_v54  ;;  %v333_v61 = vld [vmem:[%s1515_s3 + $0xa0] sm:$0xff]  ;;  %v335_v62 = vld [vmem:[%s1515_s3 + $0xb0] sm:$0xff]  ;;  %v877_v63 = vpack.c.bf16 %v336_v59, %v334_v58  ;;  %v338_v1 = vld [vmem:[%s1515_s3 + $0xc8] sm:$0xff] }
  0x10   :  { %v31_v0 = vld [vmem:[%s1516_s0 + $0x20] sm:$0xff]  ;;  %v340_v2 = vld [vmem:[%s1515_s3 + $0xd8] sm:$0xff]  ;;  %v879_v4 = vpack.c.bf16 %v335_v62, %v333_v61  ;;  %v339_v6 = vld [vmem:[%s1515_s3 + $0xd0] sm:$0xff] }
  0x11   :  { %856 = vmatpush1.bf16.msra.mxu0 %v855_v28  ;;  %v337_v5 = vld [vmem:[%s1515_s3 + $0xc0] sm:$0xff]  ;;  %v881_v7 = vpack.c.bf16 %v340_v2, %v338_v1  ;;  %v32_v8 = vld [vmem:[%s1516_s0 + $0x28] sm:$0xff]  ;;  %v344_v10 = vld [vmem:[%s1515_s3 + $0xf8] sm:$0xff] }
  0x12   :  { %858 = vmatprep.subr.bf16.mxu0 %v857_v29  ;;  %939 = vmatpush1.bf16.msra.mxu1 %v867_v46  ;;  %v342_v9 = vld [vmem:[%s1515_s3 + $0xe8] sm:$0xff]  ;;  %v883_v11 = vpack.c.bf16 %v339_v6, %v337_v5  ;;  %v341_v12 = vld [vmem:[%s1515_s3 + $0xe0] sm:$0xff]  ;;  %v343_v13 = vld [vmem:[%s1515_s3 + $0xf0] sm:$0xff] }
  0x13   :  { %924 = vmatprep.subr.bf16.mxu1 %v869_v49  ;;  %v885_v14 = vpack.c.bf16 %v344_v10, %v342_v9  ;;  %v33_v15 = vld [vmem:[%s1516_s0 + $0x30] sm:$0xff]  ;;  %v346_v16 = vld [vmem:[%s1515_s3 + $0x108] sm:$0xff]  ;;  %v348_v17 = vld [vmem:[%s1515_s3 + $0x118] sm:$0xff]  ;;  %v887_v18 = vpack.c.bf16 %v343_v13, %v341_v12  ;;  %v61_v10 = vlaneseq }
  0x14   :  { %825 = vmatmul.mubr.msk.f32.vlgmr.msra.gmra.mrb[0].mxu0 %vm71_vm0, %v27_v36  ;;  %v345_v19 = vld [vmem:[%s1515_s3 + $0x100] sm:$0xff]  ;;  %v347_v20 = vld [vmem:[%s1515_s3 + $0x110] sm:$0xff]  ;;  %v889_v21 = vpack.c.bf16 %v348_v17, %v346_v16  ;;  %v34_v22 = vld [vmem:[%s1516_s0 + $0x38] sm:$0xff] }
  0x15   :  { %190 = vmatprep.mubr.f32.mxu0 %v954_v3  ;;  %860 = vmatpush1.bf16.msra.mxu0 %v859_v32  ;;  %v350_v23 = vld [vmem:[%s1515_s3 + $0x128] sm:$0xff]  ;;  %v352_v24 = vld [vmem:[%s1515_s3 + $0x138] sm:$0xff]  ;;  %v891_v25 = vpack.c.bf16 %v347_v20, %v345_v19  ;;  %v349_v26 = vld [vmem:[%s1515_s3 + $0x120] sm:$0xff] }
  0x16   :  { %862 = vmatprep.subr.bf16.mxu0 %v861_v33  ;;  %940 = vmatpush1.bf16.msra.mxu1 %v871_v53  ;;  %v351_v27 = vld [vmem:[%s1515_s3 + $0x130] sm:$0xff]  ;;  %v893_v28 = vpack.c.bf16 %v352_v24, %v350_v23  ;;  %v35_v29 = vld [vmem:[%s1516_s0 + $0x40] sm:$0xff]  ;;  %v354_v30 = vld [vmem:[%s1515_s3 + $0x148] sm:$0xff] }
  0x17   :  { %925 = vmatprep.subr.bf16.mxu1 %v873_v56  ;;  %v356_v31 = vld [vmem:[%s1515_s3 + $0x158] sm:$0xff]  ;;  %v895_v32 = vpack.c.bf16 %v351_v27, %v349_v26  ;;  %v353_v33 = vld [vmem:[%s1515_s3 + $0x140] sm:$0xff]  ;;  %v355_v34 = vld [vmem:[%s1515_s3 + $0x150] sm:$0xff] }
  0x18   :  { %826 = vmatmul.mubr.msk.f32.gmra.mrb[2].mxu0 %vm71_vm0, %v28_v43  ;;  %v897_v35 = vpack.c.bf16 %v356_v31, %v354_v30  ;;  %v36_v36 = vld [vmem:[%s1516_s0 + $0x48] sm:$0xff]  ;;  %v360_v38 = vld [vmem:[%s1515_s3 + $0x178] sm:$0xff]  ;;  %v357_v40 = vld [vmem:[%s1515_s3 + $0x160] sm:$0xff] }
  0x19   :  { %196 = vmatprep.mubr.f32.mxu0 %v954_v3  ;;  %864 = vmatpush1.bf16.msra.mxu0 %v863_v39  ;;  %v358_v37 = vld [vmem:[%s1515_s3 + $0x168] sm:$0xff]  ;;  %v899_v39 = vpack.c.bf16 %v355_v34, %v353_v33  ;;  %v359_v41 = vld [vmem:[%s1515_s3 + $0x170] sm:$0xff]  ;;  %v364_v45 = vld [vmem:[%s1515_s3 + $0x198] sm:$0xff] }
  0x1a   :  { %866 = vmatprep.subr.bf16.mxu0 %v865_v42  ;;  %941 = vmatpush1.bf16.msra.mxu1 %v875_v60  ;;  %v901_v42 = vpack.c.bf16 %v360_v38, %v358_v37  ;;  %v37_v43 = vld [vmem:[%s1516_s0 + $0x50] sm:$0xff]  ;;  %v362_v44 = vld [vmem:[%s1515_s3 + $0x188] sm:$0xff]  ;;  %v361_v47 = vld [vmem:[%s1515_s3 + $0x180] sm:$0xff] }
  0x1b   :  { %926 = vmatprep.subr.bf16.mxu1 %v877_v63  ;;  %v363_v48 = vld [vmem:[%s1515_s3 + $0x190] sm:$0xff]  ;;  %v366_v51 = vld [vmem:[%s1515_s3 + $0x1a8] sm:$0xff]  ;;  %v368_v52 = vld [vmem:[%s1515_s3 + $0x1b8] sm:$0xff] }
  0x1c   :  { %827 = vmatmul.mubr.msk.f32.gmra.mrb[4].mxu0 %vm71_vm0, %v29_v50  ;;  %v38_v50 = vld [vmem:[%s1516_s0 + $0x58] sm:$0xff]  ;;  %v365_v54 = vld [vmem:[%s1515_s3 + $0x1a0] sm:$0xff]  ;;  %v367_v55 = vld [vmem:[%s1515_s3 + $0x1b0] sm:$0xff] }
  0x1d   :  { %202 = vmatprep.mubr.f32.mxu0 %v954_v3  ;;  %868 = vmatpush1.bf16.msra.mxu0 %v867_v46  ;;  %v903_v46 = vpack.c.bf16 %v359_v41, %v357_v40  ;;  %v370_v58 = vld [vmem:[%s1515_s3 + $0x1c8] sm:$0xff]  ;;  %v372_v59 = vld [vmem:[%s1515_s3 + $0x1d8] sm:$0xff]  ;;  %v369_v1 = vld [vmem:[%s1515_s3 + $0x1c0] sm:$0xff] }
  0x1e   :  { %870 = vmatprep.subr.bf16.mxu0 %v869_v49  ;;  %942 = vmatpush1.bf16.msra.mxu1 %v879_v4  ;;  %v905_v49 = vpack.c.bf16 %v364_v45, %v362_v44  ;;  %v913_v61 = vpack.c.bf16 %v372_v59, %v370_v58  ;;  %v40_v62 = vld [vmem:[%s1516_s0 + $0x68] sm:$0xff]  ;;  %v371_v2 = vld [vmem:[%s1515_s3 + $0x1d0] sm:$0xff]  ;;  %v376_v5 = vld [vmem:[%s1515_s3 + $0x1f8] sm:$0xff] }
  0x1f   :  { %927 = vmatprep.subr.bf16.mxu1 %v881_v7  ;;  %v59_v13 = vld [vmem:[%s1517_s2] sm:$0x3] }
  0x20   :  { %828 = vmatmul.mubr.msk.f32.gmra.mrb[6].mxu0 %vm71_vm0, %v30_v57  ;;  %v39_v57 = vld [vmem:[%s1516_s0 + $0x60] sm:$0xff] }
  0x21   :  { %208 = vmatprep.mubr.f32.mxu0 %v954_v3  ;;  %872 = vmatpush1.bf16.msra.mxu0 %v871_v53  ;;  %v907_v53 = vpack.c.bf16 %v363_v48, %v361_v47 }
  0x22   :  { %874 = vmatprep.subr.bf16.mxu0 %v873_v56  ;;  %943 = vmatpush1.bf16.msra.mxu1 %v883_v11  ;;  %v909_v56 = vpack.c.bf16 %v368_v52, %v366_v51 }
  0x23   :  { %928 = vmatprep.subr.bf16.mxu1 %v885_v14 }
  0x24   :  { %829 = vmatmul.mubr.msk.f32.gmra.mrb[8].mxu0 %vm71_vm0, %v31_v0  ;;  %v42_v0 = vld [vmem:[%s1516_s0 + $0x78] sm:$0xff] }
  0x25   :  { %214 = vmatprep.mubr.f32.mxu0 %v954_v3  ;;  %876 = vmatpush1.bf16.msra.mxu0 %v875_v60  ;;  %v911_v60 = vpack.c.bf16 %v367_v55, %v365_v54 }
  0x26   :  { %878 = vmatprep.subr.bf16.mxu0 %v877_v63  ;;  %944 = vmatpush1.bf16.msra.mxu1 %v887_v18  ;;  %v41_v63 = vld [vmem:[%s1516_s0 + $0x70] sm:$0xff] }
  0x27   :  { %929 = vmatprep.subr.bf16.mxu1 %v889_v21 }
  0x28   :  { %830 = vmatmul.mubr.msk.f32.gmra.mrb[10].mxu0 %vm71_vm0, %v32_v8  ;;  %v375_v8 = vld [vmem:[%s1515_s3 + $0x1f0] sm:$0xff] }
  0x29   :  { %220 = vmatprep.mubr.f32.mxu0 %v954_v3  ;;  %880 = vmatpush1.bf16.msra.mxu0 %v879_v4  ;;  %v915_v4 = vpack.c.bf16 %v371_v2, %v369_v1 }
  0x2a   :  { %882 = vmatprep.subr.bf16.mxu0 %v881_v7  ;;  %945 = vmatpush1.bf16.msra.mxu1 %v891_v25  ;;  %v373_v7 = vld [vmem:[%s1515_s3 + $0x1e0] sm:$0xff] }
  0x2b   :  { %930 = vmatprep.subr.bf16.mxu1 %v893_v28  ;;  %v919_v9 = vpack.c.bf16 %v375_v8, %v373_v7 }
  0x2c   :  { %831 = vmatmul.mubr.msk.f32.gmra.mrb[12].mxu0 %vm71_vm0, %v33_v15 }
  0x2d   :  { %226 = vmatprep.mubr.f32.mxu0 %v954_v3  ;;  %884 = vmatpush1.bf16.msra.mxu0 %v883_v11  ;;  %v1316_v11 = vshrl.u32 %v61_v10, 7 }
  0x2e   :  { %886 = vmatprep.subr.bf16.mxu0 %v885_v14  ;;  %946 = vmatpush1.bf16.msra.mxu1 %v895_v32 }
  0x2f   :  { %931 = vmatprep.subr.bf16.mxu1 %v897_v35  ;;  %v1319_v12 = vsub.s32 0, %v1316_v11  ;;  %v1325_v14 = vsub.s32 1, %v1316_v11 }
  0x30   :  { %832 = vmatmul.mubr.msk.f32.gmra.mrb[14].mxu0 %vm71_vm0, %v34_v22 }
  0x31   :  { %232 = vmatprep.mubr.f32.mxu0 %v954_v3  ;;  %888 = vmatpush1.bf16.msra.mxu0 %v887_v18  ;;  %v1328_v15 = vrot.slane %v59_v13, %v1319_v12  ;;  %v1331_v16 = vrot.slane %v59_v13, %v1325_v14 }
  0x32   :  { %890 = vmatprep.subr.bf16.mxu0 %v889_v21  ;;  %947 = vmatpush1.bf16.msra.mxu1 %v899_v39 }
  0x33   :  { %932 = vmatprep.subr.bf16.mxu1 %v901_v42 }
  0x34   :  { %833 = vmatmul.mubr.msk.f32.gmra.mrb[16].mxu0 %vm71_vm0, %v35_v29 }
  0x35   :  { %238 = vmatprep.mubr.f32.mxu0 %v954_v3  ;;  %892 = vmatpush1.bf16.msra.mxu0 %v891_v25 }
  0x36   :  { %894 = vmatprep.subr.bf16.mxu0 %v893_v28  ;;  %948 = vmatpush1.bf16.msra.mxu1 %v903_v46 }
  0x37   :  { %933 = vmatprep.subr.bf16.mxu1 %v905_v49 }
  0x38   :  { %834 = vmatmul.mubr.msk.f32.gmra.mrb[18].mxu0 %vm71_vm0, %v36_v36 }
  0x39   :  { %244 = vmatprep.mubr.f32.mxu0 %v954_v3  ;;  %896 = vmatpush1.bf16.msra.mxu0 %v895_v32 }
  0x3a   :  { %898 = vmatprep.subr.bf16.mxu0 %v897_v35  ;;  %949 = vmatpush1.bf16.msra.mxu1 %v907_v53 }
  0x3b   :  { %934 = vmatprep.subr.bf16.mxu1 %v909_v56 }
  0x3c   :  { %835 = vmatmul.mubr.msk.f32.gmra.mrb[20].mxu0 %vm71_vm0, %v37_v43 }
  0x3d   :  { %250 = vmatprep.mubr.f32.mxu0 %v954_v3  ;;  %900 = vmatpush1.bf16.msra.mxu0 %v899_v39 }
  0x3e   :  { %902 = vmatprep.subr.bf16.mxu0 %v901_v42  ;;  %950 = vmatpush1.bf16.msra.mxu1 %v911_v60 }
  0x3f   :  { %935 = vmatprep.subr.bf16.mxu1 %v913_v61 }
  0x40   :  { %836 = vmatmul.mubr.msk.f32.gmra.mrb[22].mxu0 %vm71_vm0, %v38_v50 }
  0x41   :  { %256 = vmatprep.mubr.f32.mxu0 %v954_v3  ;;  %904 = vmatpush1.bf16.msra.mxu0 %v903_v46 }
  0x42   :  { %906 = vmatprep.subr.bf16.mxu0 %v905_v49  ;;  %951 = vmatpush1.bf16.msra.mxu1 %v915_v4 }
  0x44   :  { %837 = vmatmul.mubr.msk.f32.gmra.mrb[24].mxu0 %vm71_vm0, %v39_v57 }
  0x45   :  { %262 = vmatprep.mubr.f32.mxu0 %v954_v3  ;;  %908 = vmatpush1.bf16.msra.mxu0 %v907_v53 }
  0x46   :  { %910 = vmatprep.subr.bf16.mxu0 %v909_v56 }
  0x48   :  { %838 = vmatmul.mubr.msk.f32.gmra.mrb[26].mxu0 %vm71_vm0, %v40_v62 }
  0x49   :  { %268 = vmatprep.mubr.f32.mxu0 %v954_v3  ;;  %912 = vmatpush1.bf16.msra.mxu0 %v911_v60 }
  0x4a   :  { %914 = vmatprep.subr.bf16.mxu0 %v913_v61 }
  0x4c   :  { %839 = vmatmul.mubr.msk.f32.gmra.mrb[28].mxu0 %vm71_vm0, %v41_v63 }
  0x4d   :  { %274 = vmatprep.mubr.f32.mxu0 %v954_v3  ;;  %916 = vmatpush1.bf16.msra.mxu0 %v915_v4  ;;  %v374_v3 = vld [vmem:[%s1515_s3 + $0x1e8] sm:$0xff] }
  0x4e   :  { %v917_v6 = vpack.c.bf16 %v376_v5, %v374_v3 }
  0x50   :  { %840 = vmatmul.mubr.msk.f32.gmra.mrb[30].mxu0 %vm71_vm0, %v42_v0  ;;  %918 = vmatprep.subr.bf16.mxu0 %v917_v6 }
  0x51   :  { %936 = vmatprep.subr.bf16.mxu1 %v917_v6  ;;  %920 = vmatpush1.bf16.msra.mxu0 %v919_v9 }
  0x52   :  { %952 = vmatpush1.bf16.msra.mxu1 %v919_v9 }
  0xe7   :  { %v186_v17 = vpop.f32.mrb[0].mxu0 }
  0xe8   :  { %v187_v18 = vadd.f32 %v186_v17, %v1328_v15  ;;  %v188_v19 = vpop.f32.mrb[1].mxu0 }
  0xe9   :  { %v189_v20 = vadd.f32 %v188_v19, %v1331_v16 }
  0xea   :  { %v281_v23 = vmax.f32 %v187_v18, 0.0 }
  0xeb   :  { %v282_v21 = vmax.f32 %v189_v20, 0.0  ;;  %v192_v22 = vpop.f32.mrb[2].mxu0 }
  0xec   :  { %v193_v24 = vadd.f32 %v192_v22, %v1328_v15  ;;  %v194_v25 = vpop.f32.mrb[3].mxu0 }
  0xed   :  { %v195_v26 = vadd.f32 %v194_v25, %v1331_v16  ;;  %453 = vmatprep.mubr.f32.mxu0 %v282_v21 }
  0xee   :  { %454 = vmatmul.mubr.f32.vlgmr.msra.gmra.mrb[32].mxu0 %v281_v23  ;;  %v283_v29 = vmax.f32 %v193_v24, 0.0 }
  0xef   :  { %v284_v27 = vmax.f32 %v195_v26, 0.0  ;;  %v198_v28 = vpop.f32.mrb[4].mxu0 }
  0xf0   :  { %v199_v30 = vadd.f32 %v198_v28, %v1328_v15  ;;  %v200_v31 = vpop.f32.mrb[5].mxu0 }
  0xf1   :  { %v201_v32 = vadd.f32 %v200_v31, %v1331_v16  ;;  %459 = vmatprep.mubr.f32.mxu0 %v284_v27 }
  0xf2   :  { %460 = vmatmul.mubr.f32.gmra.mrb[34].mxu0 %v283_v29  ;;  %v285_v35 = vmax.f32 %v199_v30, 0.0 }
  0xf3   :  { %v286_v33 = vmax.f32 %v201_v32, 0.0  ;;  %v204_v34 = vpop.f32.mrb[6].mxu0 }
  0xf4   :  { %v205_v36 = vadd.f32 %v204_v34, %v1328_v15  ;;  %v206_v37 = vpop.f32.mrb[7].mxu0 }
  0xf5   :  { %v207_v38 = vadd.f32 %v206_v37, %v1331_v16  ;;  %465 = vmatprep.mubr.f32.mxu0 %v286_v33 }
  0xf6   :  { %466 = vmatmul.mubr.f32.gmra.mrb[36].mxu0 %v285_v35  ;;  %v287_v41 = vmax.f32 %v205_v36, 0.0 }
  0xf7   :  { %v288_v39 = vmax.f32 %v207_v38, 0.0  ;;  %v210_v40 = vpop.f32.mrb[8].mxu0 }
  0xf8   :  { %v211_v42 = vadd.f32 %v210_v40, %v1328_v15  ;;  %v212_v43 = vpop.f32.mrb[9].mxu0 }
  0xf9   :  { %v213_v44 = vadd.f32 %v212_v43, %v1331_v16  ;;  %471 = vmatprep.mubr.f32.mxu0 %v288_v39 }
  0xfa   :  { %472 = vmatmul.mubr.f32.gmra.mrb[38].mxu0 %v287_v41  ;;  %v289_v47 = vmax.f32 %v211_v42, 0.0 }
  0xfb   :  { %v290_v45 = vmax.f32 %v213_v44, 0.0  ;;  %v216_v46 = vpop.f32.mrb[10].mxu0 }
  0xfc   :  { %v217_v48 = vadd.f32 %v216_v46, %v1328_v15  ;;  %v218_v49 = vpop.f32.mrb[11].mxu0 }
  0xfd   :  { %v219_v50 = vadd.f32 %v218_v49, %v1331_v16  ;;  %477 = vmatprep.mubr.f32.mxu0 %v290_v45 }
  0xfe   :  { %478 = vmatmul.mubr.f32.gmra.mrb[40].mxu0 %v289_v47  ;;  %v291_v53 = vmax.f32 %v217_v48, 0.0 }
  0xff   :  { %v292_v51 = vmax.f32 %v219_v50, 0.0  ;;  %v222_v52 = vpop.f32.mrb[12].mxu0 }
 0x100   :  { %v223_v54 = vadd.f32 %v222_v52, %v1328_v15  ;;  %v224_v55 = vpop.f32.mrb[13].mxu0 }
 0x101   :  { %483 = vmatprep.mubr.f32.mxu0 %v292_v51  ;;  %v225_v56 = vadd.f32 %v224_v55, %v1331_v16  ;;  %v377_v55 = vld [vmem:[%s1518_s4] sm:$0x3] }
 0x102   :  { %484 = vmatmul.mubr.f32.gmra.mrb[42].mxu0 %v291_v53  ;;  %v293_v59 = vmax.f32 %v223_v54, 0.0 }
 0x103   :  { %v228_v57 = vpop.f32.mrb[14].mxu0  ;;  %v294_v58 = vmax.f32 %v225_v56, 0.0  ;;  %v1369_v56 = vrot.slane %v377_v55, %v1319_v12 }
 0x104   :  { %v229_v60 = vadd.f32 %v228_v57, %v1328_v15  ;;  %v230_v61 = vpop.f32.mrb[15].mxu0  ;;  %v1372_v57 = vrot.slane %v377_v55, %v1325_v14 }
 0x105   :  { %v231_v62 = vadd.f32 %v230_v61, %v1331_v16  ;;  %489 = vmatprep.mubr.f32.mxu1 %v294_v58 }
 0x106   :  { %490 = vmatmul.mubr.f32.vlgmr.msra.gmra.mrb[0].mxu1 %v293_v59  ;;  %v295_v1 = vmax.f32 %v229_v60, 0.0 }
 0x107   :  { %v296_v63 = vmax.f32 %v231_v62, 0.0  ;;  %v234_v0 = vpop.f32.mrb[16].mxu0 }
 0x108   :  { %v235_v2 = vadd.f32 %v234_v0, %v1328_v15  ;;  %v236_v4 = vpop.f32.mrb[17].mxu0 }
 0x109   :  { %v237_v3 = vadd.f32 %v236_v4, %v1331_v16  ;;  %495 = vmatprep.mubr.f32.mxu1 %v296_v63 }
 0x10a   :  { %496 = vmatmul.mubr.f32.gmra.mrb[2].mxu1 %v295_v1  ;;  %v297_v7 = vmax.f32 %v235_v2, 0.0 }
 0x10b   :  { %v298_v5 = vmax.f32 %v237_v3, 0.0  ;;  %v240_v6 = vpop.f32.mrb[18].mxu0 }
 0x10c   :  { %v241_v8 = vadd.f32 %v240_v6, %v1328_v15  ;;  %v242_v9 = vpop.f32.mrb[19].mxu0 }
 0x10d   :  { %v243_v13 = vadd.f32 %v242_v9, %v1331_v16  ;;  %501 = vmatprep.mubr.f32.mxu1 %v298_v5 }
 0x10e   :  { %502 = vmatmul.mubr.f32.gmra.mrb[4].mxu1 %v297_v7  ;;  %v299_v19 = vmax.f32 %v241_v8, 0.0 }
 0x10f   :  { %v300_v17 = vmax.f32 %v243_v13, 0.0  ;;  %v246_v18 = vpop.f32.mrb[20].mxu0 }
 0x110   :  { %v247_v20 = vadd.f32 %v246_v18, %v1328_v15  ;;  %v248_v21 = vpop.f32.mrb[21].mxu0 }
 0x111   :  { %v249_v22 = vadd.f32 %v248_v21, %v1331_v16  ;;  %507 = vmatprep.mubr.f32.mxu1 %v300_v17 }
 0x112   :  { %508 = vmatmul.mubr.f32.gmra.mrb[6].mxu1 %v299_v19  ;;  %v301_v25 = vmax.f32 %v247_v20, 0.0 }
 0x113   :  { %v302_v23 = vmax.f32 %v249_v22, 0.0  ;;  %v252_v24 = vpop.f32.mrb[22].mxu0 }
 0x114   :  { %v253_v26 = vadd.f32 %v252_v24, %v1328_v15  ;;  %v254_v27 = vpop.f32.mrb[23].mxu0 }
 0x115   :  { %v255_v28 = vadd.f32 %v254_v27, %v1331_v16  ;;  %513 = vmatprep.mubr.f32.mxu1 %v302_v23 }
 0x116   :  { %514 = vmatmul.mubr.f32.gmra.mrb[8].mxu1 %v301_v25  ;;  %v303_v31 = vmax.f32 %v253_v26, 0.0 }
 0x117   :  { %v304_v29 = vmax.f32 %v255_v28, 0.0  ;;  %v258_v30 = vpop.f32.mrb[24].mxu0 }
 0x118   :  { %v259_v32 = vadd.f32 %v258_v30, %v1328_v15  ;;  %v260_v33 = vpop.f32.mrb[25].mxu0 }
 0x119   :  { %v261_v34 = vadd.f32 %v260_v33, %v1331_v16  ;;  %519 = vmatprep.mubr.f32.mxu1 %v304_v29 }
 0x11a   :  { %520 = vmatmul.mubr.f32.gmra.mrb[10].mxu1 %v303_v31  ;;  %v305_v37 = vmax.f32 %v259_v32, 0.0 }
 0x11b   :  { %v306_v35 = vmax.f32 %v261_v34, 0.0  ;;  %v264_v36 = vpop.f32.mrb[26].mxu0 }
 0x11c   :  { %v265_v38 = vadd.f32 %v264_v36, %v1328_v15  ;;  %v266_v39 = vpop.f32.mrb[27].mxu0 }
 0x11d   :  { %v267_v40 = vadd.f32 %v266_v39, %v1331_v16  ;;  %525 = vmatprep.mubr.f32.mxu1 %v306_v35 }
 0x11e   :  { %526 = vmatmul.mubr.f32.gmra.mrb[12].mxu1 %v305_v37  ;;  %v307_v43 = vmax.f32 %v265_v38, 0.0 }
 0x11f   :  { %v308_v41 = vmax.f32 %v267_v40, 0.0  ;;  %v270_v42 = vpop.f32.mrb[28].mxu0 }
 0x120   :  { %v271_v44 = vadd.f32 %v270_v42, %v1328_v15  ;;  %v272_v45 = vpop.f32.mrb[29].mxu0 }
 0x121   :  { %v273_v46 = vadd.f32 %v272_v45, %v1331_v16  ;;  %531 = vmatprep.mubr.f32.mxu1 %v308_v41 }
 0x122   :  { %532 = vmatmul.mubr.f32.gmra.mrb[14].mxu1 %v307_v43  ;;  %v309_v49 = vmax.f32 %v271_v44, 0.0 }
 0x123   :  { %v310_v47 = vmax.f32 %v273_v46, 0.0  ;;  %v276_v48 = vpop.f32.mrb[30].mxu0 }
 0x124   :  { %v277_v50 = vadd.f32 %v276_v48, %v1328_v15  ;;  %v278_v51 = vpop.f32.mrb[31].mxu0  ;;  %v582_v15 = vld [vmem:[%s1519_s5] sm:$0x3] }
 0x125   :  { %v279_v52 = vadd.f32 %v278_v51, %v1331_v16  ;;  %537 = vmatprep.mubr.f32.mxu1 %v310_v47  ;;  %v1379_v60 = vrot.slane %v582_v15, %v1319_v12  ;;  %v1383_v62 = vrot.slane %v582_v15, %v1325_v14 }
 0x126   :  { %538 = vmatmul.mubr.f32.gmra.mrb[16].mxu1 %v309_v49  ;;  %v311_v54 = vmax.f32 %v277_v50, 0.0 }
 0x127   :  { %v312_v53 = vmax.f32 %v279_v52, 0.0 }
 0x129   :  { %543 = vmatprep.mubr.f32.mxu1 %v312_v53 }
 0x12a   :  { %544 = vmatmul.mubr.f32.gmra.mrb[18].mxu1 %v311_v54 }
 0x1c1   :  { %v455_v16 = vpop.f32.mrb[32].mxu0 }
 0x1c2   :  { %v456_v58 = vadd.f32 %v455_v16, %v1369_v56  ;;  %v457_v59 = vpop.f32.mrb[33].mxu0 }
 0x1c3   :  { %v458_v61 = vadd.f32 %v457_v59, %v1372_v57 }
 0x1c4   :  { %v550_v63 = vmax.f32 %v456_v58, 0.0 }
 0x1c5   :  { %v551_v0 = vmax.f32 %v458_v61, 0.0  ;;  %v461_v1 = vpop.f32.mrb[34].mxu0 }
 0x1c6   :  { %v462_v2 = vadd.f32 %v461_v1, %v1369_v56  ;;  %v463_v4 = vpop.f32.mrb[35].mxu0  ;;  %v594_v3 = vmul.f32 %v1379_v60, %v550_v63 }
 0x1c7   :  { %v464_v5 = vadd.f32 %v463_v4, %v1372_v57  ;;  %v595_v6 = vmul.f32 %v1383_v62, %v551_v0 }
 0x1c8   :  { %v552_v7 = vmax.f32 %v462_v2, 0.0 }
 0x1c9   :  { %v553_v12 = vmax.f32 %v464_v5, 0.0  ;;  %v467_v8 = vpop.f32.mrb[36].mxu0  ;;  %v626_v9 = vadd.f32 %v595_v6, %v594_v3 }
 0x1ca   :  { %v596_v13 = vmul.f32 %v1379_v60, %v552_v7  ;;  %v468_v14 = vadd.f32 %v467_v8, %v1369_v56  ;;  %v469_v17 = vpop.f32.mrb[37].mxu0 }
 0x1cb   :  { %v597_v18 = vmul.f32 %v1383_v62, %v553_v12  ;;  %v470_v19 = vadd.f32 %v469_v17, %v1372_v57  ;;  %627 = vadd.xlane.f32.xlu0 %v626_v9 }
 0x1cc   :  { %v554_v20 = vmax.f32 %v468_v14, 0.0 }
 0x1cd   :  { %v555_v21 = vmax.f32 %v470_v19, 0.0  ;;  %v473_v22 = vpop.f32.mrb[38].mxu0  ;;  %v629_v23 = vadd.f32 %v597_v18, %v596_v13 }
 0x1ce   :  { %v474_v24 = vadd.f32 %v473_v22, %v1369_v56  ;;  %v475_v25 = vpop.f32.mrb[39].mxu0  ;;  %v598_v26 = vmul.f32 %v1379_v60, %v554_v20 }
 0x1cf   :  { %v476_v27 = vadd.f32 %v475_v25, %v1372_v57  ;;  %630 = vadd.xlane.f32.xlu0 %v629_v23  ;;  %v599_v28 = vmul.f32 %v1383_v62, %v555_v21 }
 0x1d0   :  { %v556_v29 = vmax.f32 %v474_v24, 0.0 }
 0x1d1   :  { %v557_v30 = vmax.f32 %v476_v27, 0.0  ;;  %v479_v31 = vpop.f32.mrb[40].mxu0  ;;  %v632_v32 = vadd.f32 %v599_v28, %v598_v26 }
 0x1d2   :  { %v600_v33 = vmul.f32 %v1379_v60, %v556_v29  ;;  %v480_v34 = vadd.f32 %v479_v31, %v1369_v56  ;;  %v481_v35 = vpop.f32.mrb[41].mxu0 }
 0x1d3   :  { %v601_v36 = vmul.f32 %v1383_v62, %v557_v30  ;;  %v482_v37 = vadd.f32 %v481_v35, %v1372_v57  ;;  %633 = vadd.xlane.f32.xlu1 %v632_v32 }
 0x1d4   :  { %v558_v38 = vmax.f32 %v480_v34, 0.0 }
 0x1d5   :  { %v559_v39 = vmax.f32 %v482_v37, 0.0  ;;  %v485_v40 = vpop.f32.mrb[42].mxu0  ;;  %v635_v41 = vadd.f32 %v601_v36, %v600_v33 }
 0x1d6   :  { %v602_v42 = vmul.f32 %v1379_v60, %v558_v38  ;;  %v486_v43 = vadd.f32 %v485_v40, %v1369_v56  ;;  %v487_v44 = vpop.f32.mrb[43].mxu0 }
 0x1d7   :  { %v603_v45 = vmul.f32 %v1383_v62, %v559_v39  ;;  %v488_v46 = vadd.f32 %v487_v44, %v1372_v57  ;;  %636 = vadd.xlane.f32.xlu1 %v635_v41 }
 0x1d8   :  { %v560_v47 = vmax.f32 %v486_v43, 0.0 }
 0x1d9   :  { %v561_v48 = vmax.f32 %v488_v46, 0.0  ;;  %v491_v49 = vpop.f32.mrb[0].mxu1  ;;  %v638_v50 = vadd.f32 %v603_v45, %v602_v42 }
 0x1da   :  { %v604_v51 = vmul.f32 %v1379_v60, %v560_v47  ;;  %v492_v52 = vadd.f32 %v491_v49, %v1369_v56  ;;  %v493_v53 = vpop.f32.mrb[1].mxu1 }
 0x1db   :  { %v605_v54 = vmul.f32 %v1383_v62, %v561_v48  ;;  %v494_v55 = vadd.f32 %v493_v53, %v1372_v57  ;;  %639 = vadd.xlane.f32.xlu0 %v638_v50 }
 0x1dc   :  { %v562_v15 = vmax.f32 %v492_v52, 0.0 }
 0x1dd   :  { %v563_v16 = vmax.f32 %v494_v55, 0.0  ;;  %v497_v58 = vpop.f32.mrb[2].mxu1  ;;  %v641_v59 = vadd.f32 %v605_v54, %v604_v51 }
 0x1de   :  { %v606_v61 = vmul.f32 %v1379_v60, %v562_v15  ;;  %v498_v63 = vadd.f32 %v497_v58, %v1369_v56  ;;  %v499_v0 = vpop.f32.mrb[3].mxu1 }
 0x1df   :  { %v607_v1 = vmul.f32 %v1383_v62, %v563_v16  ;;  %v500_v2 = vadd.f32 %v499_v0, %v1372_v57  ;;  %642 = vadd.xlane.f32.xlu1 %v641_v59 }
 0x1e0   :  { %v564_v4 = vmax.f32 %v498_v63, 0.0 }
 0x1e1   :  { %v565_v3 = vmax.f32 %v500_v2, 0.0  ;;  %v503_v5 = vpop.f32.mrb[4].mxu1  ;;  %v644_v6 = vadd.f32 %v607_v1, %v606_v61 }
 0x1e2   :  { %v608_v7 = vmul.f32 %v1379_v60, %v564_v4  ;;  %v504_v12 = vadd.f32 %v503_v5, %v1369_v56  ;;  %v505_v8 = vpop.f32.mrb[5].mxu1 }
 0x1e3   :  { %v609_v9 = vmul.f32 %v1383_v62, %v565_v3  ;;  %v506_v13 = vadd.f32 %v505_v8, %v1372_v57  ;;  %645 = vadd.xlane.f32.xlu0 %v644_v6 }
 0x1e4   :  { %v566_v14 = vmax.f32 %v504_v12, 0.0 }
 0x1e5   :  { %v567_v17 = vmax.f32 %v506_v13, 0.0  ;;  %v509_v18 = vpop.f32.mrb[6].mxu1  ;;  %v647_v19 = vadd.f32 %v609_v9, %v608_v7 }
 0x1e6   :  { %v610_v20 = vmul.f32 %v1379_v60, %v566_v14  ;;  %v510_v21 = vadd.f32 %v509_v18, %v1369_v56  ;;  %v511_v22 = vpop.f32.mrb[7].mxu1 }
 0x1e7   :  { %v611_v23 = vmul.f32 %v1383_v62, %v567_v17  ;;  %v512_v24 = vadd.f32 %v511_v22, %v1372_v57  ;;  %648 = vadd.xlane.f32.xlu1 %v647_v19 }
 0x1e8   :  { %v568_v25 = vmax.f32 %v510_v21, 0.0 }
 0x1e9   :  { %v569_v26 = vmax.f32 %v512_v24, 0.0  ;;  %v515_v27 = vpop.f32.mrb[8].mxu1  ;;  %v650_v28 = vadd.f32 %v611_v23, %v610_v20 }
 0x1ea   :  { %v612_v29 = vmul.f32 %v1379_v60, %v568_v25  ;;  %v516_v30 = vadd.f32 %v515_v27, %v1369_v56  ;;  %v517_v31 = vpop.f32.mrb[9].mxu1 }
 0x1eb   :  { %v613_v32 = vmul.f32 %v1383_v62, %v569_v26  ;;  %v518_v33 = vadd.f32 %v517_v31, %v1372_v57  ;;  %651 = vadd.xlane.f32.xlu0 %v650_v28 }
 0x1ec   :  { %v570_v34 = vmax.f32 %v516_v30, 0.0  ;;  %v1448_v30 = vand.u32 127, %v61_v10 }
 0x1ed   :  { %v571_v35 = vmax.f32 %v518_v33, 0.0  ;;  %v521_v36 = vpop.f32.mrb[10].mxu1  ;;  %v653_v37 = vadd.f32 %v613_v32, %v612_v29 }
 0x1ee   :  { %v614_v38 = vmul.f32 %v1379_v60, %v570_v34  ;;  %v522_v39 = vadd.f32 %v521_v36, %v1369_v56  ;;  %v523_v40 = vpop.f32.mrb[11].mxu1  ;;  %v714_v32 = vadd.s32 4294967288, %v1448_v30  ;;  %v721_v33 = vadd.s32 4294967280, %v1448_v30 }
 0x1ef   :  { %v615_v41 = vmul.f32 %v1383_v62, %v571_v35  ;;  %v524_v42 = vadd.f32 %v523_v40, %v1372_v57  ;;  %654 = vadd.xlane.f32.xlu1 %v653_v37  ;;  %v1457_v35 = vstv %s1520_s6  ;;  %v712_v10 = vsub.s32 %v1448_v30, %v1316_v11 }
 0x1f0   :  { %v572_v43 = vmax.f32 %v522_v39, 0.0  ;;  %v742_v36 = vadd.s32 4294967256, %v1448_v30  ;;  %v724_v39 = vsub.s32 %v721_v33, %v1316_v11  ;;  %v749_v40 = vadd.s32 4294967248, %v1448_v30 }
 0x1f1   :  { %v573_v44 = vmax.f32 %v524_v42, 0.0  ;;  %v527_v45 = vpop.f32.mrb[12].mxu1  ;;  %v656_v46 = vadd.f32 %v615_v41, %v614_v38  ;;  %v717_v38 = vsub.s32 %v714_v32, %v1316_v11  ;;  %v756_v42 = vadd.s32 4294967240, %v1448_v30 }
 0x1f2   :  { %v616_v47 = vmul.f32 %v1379_v60, %v572_v43  ;;  %v528_v48 = vadd.f32 %v527_v45, %v1369_v56  ;;  %v529_v49 = vpop.f32.mrb[13].mxu1  ;;  %v763_v45 = vadd.s32 4294967232, %v1448_v30 }
 0x1f3   :  { %v617_v50 = vmul.f32 %v1383_v62, %v573_v44  ;;  %v530_v51 = vadd.f32 %v529_v49, %v1372_v57  ;;  %657 = vadd.xlane.f32.xlu0 %v656_v46  ;;  %v770_v49 = vadd.s32 4294967224, %v1448_v30 }
 0x1f4   :  { %v574_v52 = vmax.f32 %v528_v48, 0.0  ;;  %v745_v48 = vsub.s32 %v742_v36, %v1316_v11 }
 0x1f5   :  { %v575_v53 = vmax.f32 %v530_v51, 0.0  ;;  %v533_v54 = vpop.f32.mrb[14].mxu1  ;;  %v659_v55 = vadd.f32 %v617_v50, %v616_v47 }
 0x1f6   :  { %v618_v15 = vmul.f32 %v1379_v60, %v574_v52  ;;  %v534_v16 = vadd.f32 %v533_v54, %v1369_v56  ;;  %v535_v58 = vpop.f32.mrb[15].mxu1 }
 0x1f7   :  { %v619_v59 = vmul.f32 %v1383_v62, %v575_v53  ;;  %v536_v61 = vadd.f32 %v535_v58, %v1372_v57  ;;  %660 = vadd.xlane.f32.xlu1 %v659_v55  ;;  %v752_v53 = vsub.s32 %v749_v40, %v1316_v11  ;;  %v759_v55 = vsub.s32 %v756_v42, %v1316_v11 }
 0x1f8   :  { %v576_v63 = vmax.f32 %v534_v16, 0.0 }
 0x1f9   :  { %v577_v0 = vmax.f32 %v536_v61, 0.0  ;;  %v539_v1 = vpop.f32.mrb[16].mxu1  ;;  %v662_v2 = vadd.f32 %v619_v59, %v618_v15  ;;  %v777_v15 = vadd.s32 4294967216, %v1448_v30  ;;  %v766_v59 = vsub.s32 %v763_v45, %v1316_v11 }
 0x1fa   :  { %v620_v4 = vmul.f32 %v1379_v60, %v576_v63  ;;  %v540_v3 = vadd.f32 %v539_v1, %v1369_v56  ;;  %v541_v5 = vpop.f32.mrb[17].mxu1  ;;  %v784_v63 = vadd.s32 4294967208, %v1448_v30 }
 0x1fb   :  { %v621_v6 = vmul.f32 %v1383_v62, %v577_v0  ;;  %v542_v7 = vadd.f32 %v541_v5, %v1372_v57  ;;  %663 = vadd.xlane.f32.xlu0 %v662_v2  ;;  %v773_v2 = vsub.s32 %v770_v49, %v1316_v11 }
 0x1fc   :  { %v578_v12 = vmax.f32 %v540_v3, 0.0 }
 0x1fd   :  { %v579_v8 = vmax.f32 %v542_v7, 0.0  ;;  %v545_v9 = vpop.f32.mrb[18].mxu1  ;;  %v665_v13 = vadd.f32 %v621_v6, %v620_v4  ;;  %v791_v7 = vadd.s32 4294967200, %v1448_v30 }
 0x1fe   :  { %v622_v14 = vmul.f32 %v1379_v60, %v578_v12  ;;  %v546_v17 = vadd.f32 %v545_v9, %v1369_v56  ;;  %v547_v18 = vpop.f32.mrb[19].mxu1  ;;  %v780_v9 = vsub.s32 %v777_v15, %v1316_v11 }
 0x1ff   :  { %v623_v19 = vmul.f32 %v1383_v62, %v579_v8  ;;  %v548_v20 = vadd.f32 %v547_v18, %v1372_v57  ;;  %666 = vadd.xlane.f32.xlu1 %v665_v13  ;;  %v798_v13 = vadd.s32 4294967192, %v1448_v30 }
 0x200   :  { %v580_v21 = vmax.f32 %v546_v17, 0.0 }
 0x201   :  { %v581_v22 = vmax.f32 %v548_v20, 0.0  ;;  %v668_v23 = vadd.f32 %v623_v19, %v622_v14  ;;  %v787_v19 = vsub.s32 %v784_v63, %v1316_v11  ;;  %v801_v32 = vsub.s32 %v798_v13, %v1316_v11 }
 0x202   :  { %v624_v24 = vmul.f32 %v1379_v60, %v580_v21  ;;  %v728_v60 = vadd.s32 4294967272, %v1448_v30 }
 0x203   :  { %v625_v25 = vmul.f32 %v1383_v62, %v581_v22  ;;  %669 = vadd.xlane.f32.xlu0 %v668_v23  ;;  %v735_v62 = vadd.s32 4294967264, %v1448_v30 }
 0x204   :  { %v731_v41 = vsub.s32 %v728_v60, %v1316_v11 }
 0x205   :  { %v671_v26 = vadd.f32 %v625_v25, %v624_v24  ;;  %v738_v44 = vsub.s32 %v735_v62, %v1316_v11  ;;  %v805_v25 = vadd.s32 4294967184, %v1448_v30 }
 0x207   :  { %672 = vadd.xlane.f32.xlu1 %v671_v26 }
 0x258   :  { %v628_v27 = vpop.xlane.xlu0 %627 }
 0x259   :  { %v676_v51 = vadd.f32 %v1457_v35, %v628_v27 }
 0x25b   :  { %v713_v3 = vrot.slane %v676_v51, %v712_v10 }
 0x25c   :  { %v631_v29 = vpop.xlane.xlu0 %630 }
 0x25d   :  { %v677_v43 = vadd.f32 %v1457_v35, %v631_v29  ;;  %v794_v29 = vsub.s32 %v791_v7, %v1316_v11 }
 0x25f   :  { %v718_v16 = vrot.slane %v677_v43, %v717_v38 }
 0x260   :  { %v634_v28 = vpop.xlane.xlu1 %633 }
 0x261   :  { %v678_v47 = vadd.f32 %v1457_v35, %v634_v28  ;;  %v720_v14 = vsel %vm719_vm1, %v718_v16, %v713_v3 }
 0x263   :  { %v725_v0 = vrot.slane %v678_v47, %v724_v39 }
 0x264   :  { %v637_v56 = vpop.xlane.xlu1 %636 }
 0x265   :  { %v679_v52 = vadd.f32 %v1457_v35, %v637_v56  ;;  %v727_v21 = vsel %vm726_vm2, %v725_v0, %v720_v14 }
 0x267   :  { %v732_v5 = vrot.slane %v679_v52, %v731_v41 }
 0x268   :  { %v640_v31 = vpop.xlane.xlu0 %639 }
 0x269   :  { %v680_v54 = vadd.f32 %v1457_v35, %v640_v31  ;;  %v734_v26 = vsel %vm733_vm3, %v732_v5, %v727_v21 }
 0x26b   :  { %v739_v12 = vrot.slane %v680_v54, %v738_v44 }
 0x26c   :  { %v643_v57 = vpop.xlane.xlu1 %642 }
 0x26d   :  { %v681_v58 = vadd.f32 %v1457_v35, %v643_v57  ;;  %v741_v56 = vsel %vm740_vm4, %v739_v12, %v734_v26 }
 0x26f   :  { %v746_v17 = vrot.slane %v681_v58, %v745_v48 }
 0x270   :  { %v646_v34 = vpop.xlane.xlu0 %645 }
 0x271   :  { %v682_v1 = vadd.f32 %v1457_v35, %v646_v34  ;;  %v748_v33 = vsel %vm747_vm5, %v746_v17, %v741_v56  ;;  %v812_v34 = vadd.s32 4294967176, %v1448_v30 }
 0x273   :  { %v753_v22 = vrot.slane %v682_v1, %v752_v53  ;;  %v815_v45 = vsub.s32 %v812_v34, %v1316_v11 }
 0x274   :  { %v649_v37 = vpop.xlane.xlu1 %648 }
 0x275   :  { %v683_v6 = vadd.f32 %v1457_v35, %v649_v37  ;;  %v755_v10 = vsel %vm754_vm6, %v753_v22, %v748_v33  ;;  %v808_v37 = vsub.s32 %v805_v25, %v1316_v11 }
 0x277   :  { %v760_v27 = vrot.slane %v683_v6, %v759_v55 }
 0x278   :  { %v652_v46 = vpop.xlane.xlu0 %651 }
 0x279   :  { %v684_v8 = vadd.f32 %v1457_v35, %v652_v46  ;;  %v762_v39 = vsel %vm761_vm7, %v760_v27, %v755_v10 }
 0x27b   :  { %v767_v31 = vrot.slane %v684_v8, %v766_v59 }
 0x27c   :  { %v655_v50 = vpop.xlane.xlu1 %654 }
 0x27d   :  { %v685_v18 = vadd.f32 %v1457_v35, %v655_v50  ;;  %v769_v42 = vsel %vm768_vm8, %v767_v31, %v762_v39 }
 0x27f   :  { %v774_v60 = vrot.slane %v685_v18, %v773_v2 }
 0x280   :  { %v658_v61 = vpop.xlane.xlu0 %657 }
 0x281   :  { %v686_v23 = vadd.f32 %v1457_v35, %v658_v61  ;;  %v776_v44 = vsel %vm775_vm9, %v774_v60, %v769_v42 }
 0x283   :  { %v781_v36 = vrot.slane %v686_v23, %v780_v9 }
 0x284   :  { %v661_v4 = vpop.xlane.xlu1 %660 }
 0x285   :  { %v687_v28 = vadd.f32 %v1457_v35, %v661_v4  ;;  %v783_v46 = vsel %vm782_vm10, %v781_v36, %v776_v44 }
 0x287   :  { %v788_v40 = vrot.slane %v687_v28, %v787_v19 }
 0x288   :  { %v664_v20 = vpop.xlane.xlu0 %663 }
 0x289   :  { %v688_v57 = vadd.f32 %v1457_v35, %v664_v20  ;;  %v790_v49 = vsel %vm789_vm11, %v788_v40, %v783_v46 }
 0x28b   :  { %v795_v43 = vrot.slane %v688_v57, %v794_v29 }
 0x28c   :  { %v667_v24 = vpop.xlane.xlu1 %666 }
 0x28d   :  { %v689_v62 = vadd.f32 %v1457_v35, %v667_v24  ;;  %v797_v51 = vsel %vm796_vm12, %v795_v43, %v790_v49 }
 0x28f   :  { %v802_v30 = vrot.slane %v689_v62, %v801_v32 }
 0x290   :  { %v670_v38 = vpop.xlane.xlu0 %669 }
 0x291   :  { %v690_v41 = vadd.f32 %v1457_v35, %v670_v38  ;;  %v804_v52 = vsel %vm803_vm13, %v802_v30, %v797_v51 }
 0x293   :  { %v809_v47 = vrot.slane %v690_v41, %v808_v37 }
 0x294   :  { %v673_v48 = vpop.xlane.xlu1 %672 }
 0x295   :  { %v691_v50 = vadd.f32 %v1457_v35, %v673_v48  ;;  %v811_v54 = vsel %vm810_vm14, %v809_v47, %v804_v52 }
 0x297   :  { %v816_v53 = vrot.slane %v691_v50, %v815_v45 }
 0x299   :  { %v818_v55 = vsel %vm817_vm15, %v816_v53, %v811_v54 }
 0x29a   :  { %820 = vst [vmem:[%s1521_s7] sm:$0x1] %v818_v55 }

</bundles_post_ra>
